<compile_context>
chip_gen: v5e
topology: v5e:2x2
jax: 0.10.0
libtpu: 0.0.40
codegen_flags: <defaults>
</compile_context>

<pallas_src>
import functools
import math

import jax
import jax.numpy as jnp
from jax.experimental import pallas as pl
from jax.experimental.pallas import tpu as pltpu


def mha_kernel(
    x_ref, m_ref,
    wq_ref, bq_ref, wk_ref, bk_ref, wv_ref, bv_ref, wo_ref, bo_ref,
    o_ref,
    *, num_heads, inv_scale,
):
    x = x_ref[0]                                   # (S, D) f32
    m = m_ref[0, 0].astype(jnp.float32)            # (S,)
    S, D = x.shape
    H = num_heads

    # Broadcast activations over the head batch dim once; all head projections
    # then run as a single batched MXU matmul (no lane slicing, no concat).
    xb = jnp.broadcast_to(x.astype(jnp.bfloat16)[None], (H, S, D))

    def head_proj(w_ref, b_ref):
        # (H, S, D) @ (H, D, Dh) -> (H, S, Dh), f32 accumulation.
        out = jax.lax.dot_general(
            xb, w_ref[...],
            dimension_numbers=(((2,), (1,)), ((0,), (0,))),
            preferred_element_type=jnp.float32)
        return out + b_ref[...]

    q = head_proj(wq_ref, bq_ref) * inv_scale      # scale folded into q once
    k = head_proj(wk_ref, bk_ref)
    v = head_proj(wv_ref, bv_ref)

    # Additive mask bias, computed once per batch element (shared by all heads).
    mm = m[:, None] * m[None, :]                   # (S, S)
    bias = jnp.where(mm == 0.0, -1e12, 0.0)        # (S, S) f32

    # scores: (H, S, S) = batched q @ k^T   ('hqd,hkd->hqk')
    s = jax.lax.dot_general(
        q.astype(jnp.bfloat16), k.astype(jnp.bfloat16),
        dimension_numbers=(((2,), (2,)), ((0,), (0,))),
        preferred_element_type=jnp.float32)
    s = s + bias[None, :, :]

    # softmax in f32; denominator reciprocal runs on the (otherwise idle) EUP.
    s = s - jnp.max(s, axis=-1, keepdims=True)
    p = jnp.exp(s)
    p = p * pl.reciprocal(jnp.sum(p, axis=-1, keepdims=True), approx=True)
    # TODO(synk): attention_dropout / resid_dropout are identity (eval mode).

    # context: (H, S, Dh) = batched p @ v   ('hqk,hkd->hqd')
    ctx = jax.lax.dot_general(
        p.astype(jnp.bfloat16), v.astype(jnp.bfloat16),
        dimension_numbers=(((2,), (1,)), ((0,), (0,))),
        preferred_element_type=jnp.float32)

    # Output projection: contract head & head-dim via a batched matmul plus a
    # cheap leading-dim reduction (avoids any lane-axis reshape / concat).
    partial = jax.lax.dot_general(
        ctx.astype(jnp.bfloat16), wo_ref[...],
        dimension_numbers=(((2,), (1,)), ((0,), (0,))),
        preferred_element_type=jnp.float32)        # (H, S, D)
    out = jnp.sum(partial, axis=0) + bo_ref[...]   # (S, D)

    o_ref[0] = out.astype(o_ref.dtype)


def multi_head_attention(x, masks, params, num_heads):
    """x: (B, S, D) float32, masks: (B, S) float/bool-like (1 = valid)."""
    B, S, D = x.shape
    H = num_heads
    Dh = D // H
    inv_scale = 1.0 / math.sqrt(D)   # PyTorch scales by sqrt(hidden_dim)

    masks_r = masks.reshape(B, 1, S).astype(jnp.float32)

    # Per-head weight layout prepared once on the wrapper side so the kernel
    # never splits the lane dimension; weights are fed to the MXU as bf16.
    def per_head_w(w):                      # (D, D) -> (H, D, Dh)
        return jnp.transpose(w.reshape(D, H, Dh), (1, 0, 2)).astype(jnp.bfloat16)

    def per_head_b(b):                      # (1, D) -> (H, 1, Dh)
        return b.reshape(H, 1, Dh).astype(jnp.float32)

    wq = per_head_w(params["wq"]); bq = per_head_b(params["bq"])
    wk = per_head_w(params["wk"]); bk = per_head_b(params["bk"])
    wv = per_head_w(params["wv"]); bv = per_head_b(params["bv"])
    wo = params["wo"].reshape(H, Dh, D).astype(jnp.bfloat16)   # (H, Dh, D)
    bo = params["bo"].astype(jnp.float32)                      # (1, D)

    param_list = [wq, bq, wk, bk, wv, bv, wo, bo]

    def full_spec(shape):
        n = len(shape)
        return pl.BlockSpec(shape, lambda b, _n=n: (0,) * _n)

    in_specs = [
        pl.BlockSpec((1, S, D), lambda b: (b, 0, 0)),   # hidden_states (per batch)
        pl.BlockSpec((1, 1, S), lambda b: (b, 0, 0)),   # masks (per batch)
    ] + [full_spec(p.shape) for p in param_list]

    kernel = functools.partial(mha_kernel, num_heads=H, inv_scale=inv_scale)

    return pl.pallas_call(
        kernel,
        out_shape=jax.ShapeDtypeStruct((B, S, D), x.dtype),
        grid=(B,),
        in_specs=in_specs,
        out_specs=pl.BlockSpec((1, S, D), lambda b: (b, 0, 0)),
        compiler_params=pltpu.CompilerParams(
            dimension_semantics=("parallel",),
            vmem_limit_bytes=32 * 1024 * 1024),
    )(x, masks_r, *param_list)


def init_params(key, hidden_dim):
    D = hidden_dim
    keys = jax.random.split(key, 8)
    s = 0.02
    return {
        "wq": s * jax.random.normal(keys[0], (D, D), jnp.float32),
        "bq": s * jax.random.normal(keys[1], (1, D), jnp.float32),
        "wk": s * jax.random.normal(keys[2], (D, D), jnp.float32),
        "bk": s * jax.random.normal(keys[3], (1, D), jnp.float32),
        "wv": s * jax.random.normal(keys[4], (D, D), jnp.float32),
        "bv": s * jax.random.normal(keys[5], (1, D), jnp.float32),
        "wo": s * jax.random.normal(keys[6], (D, D), jnp.float32),
        "bo": s * jax.random.normal(keys[7], (1, D), jnp.float32),
    }


def multi_head_attention_ref(x, masks, params, num_heads):
    """Pure-JAX f32 reference with the PyTorch semantics (dropout = identity)."""
    B, S, D = x.shape
    H = num_heads
    Dh = D // H
    scale = math.sqrt(D)

    def lin(a, w, b):
        return a @ w + b

    q = lin(x, params["wq"], params["bq"]).reshape(B, S, H, Dh).transpose(0, 2, 1, 3)
    k = lin(x, params["wk"], params["bk"]).reshape(B, S, H, Dh).transpose(0, 2, 1, 3)
    v = lin(x, params["wv"], params["bv"]).reshape(B, S, H, Dh).transpose(0, 2, 1, 3)
    scores = jnp.einsum("bhqd,bhkd->bhqk", q, k) / scale
    m = masks.astype(jnp.float32)
    mm = (m[:, :, None] @ m[:, None, :])[:, None, :, :]
    scores = jnp.where(mm == 0.0, -1e12, scores)
    attn = jax.nn.softmax(scores, axis=-1)
    ctx = jnp.einsum("bhqk,bhkd->bhqd", attn, v).transpose(0, 2, 1, 3).reshape(B, S, D)
    return lin(ctx, params["wo"], params["bo"])


if __name__ == "__main__":
    B, S, D, H = 2, 8, 32, 4   # batch, max_seq_len, hidden_dim, num_attention_heads

    key = jax.random.PRNGKey(0)
    kx, kp = jax.random.split(key)
    x = jax.random.normal(kx, (B, S, D), jnp.float32)
    # valid lengths 8 and 5 -> second sequence is padded
    lengths = jnp.array([8, 5])
    masks = (jnp.arange(S)[None, :] < lengths[:, None]).astype(jnp.float32)

    params = init_params(kp, D)

    out = multi_head_attention(x, masks, params, num_heads=H)
    out = jax.block_until_ready(out)

    ref = multi_head_attention_ref(x, masks, params, num_heads=H)
    assert out.shape == (B, S, D)
    # Tolerance loosened vs the pure-f32 reference because GEMM operands are
    # fed to the MXU as bf16 (accumulation stays f32).
    assert jnp.allclose(out, ref, atol=1e-2, rtol=1e-2), float(
        jnp.max(jnp.abs(out - ref)))

    print("KERNEL_OK")
</pallas_src>

<mosaic_0001>
module attributes {stable_mosaic.version = 11 : i64} {
  func.func @mha_kernel(%arg0: i32, %arg1: memref<1x8x32xf32, #tpu.memory_space<vmem>>, %arg2: memref<1x1x8xf32, #tpu.memory_space<vmem>>, %arg3: memref<4x32x8xbf16, #tpu.memory_space<vmem>>, %arg4: memref<4x1x8xf32, #tpu.memory_space<vmem>>, %arg5: memref<4x32x8xbf16, #tpu.memory_space<vmem>>, %arg6: memref<4x1x8xf32, #tpu.memory_space<vmem>>, %arg7: memref<4x32x8xbf16, #tpu.memory_space<vmem>>, %arg8: memref<4x1x8xf32, #tpu.memory_space<vmem>>, %arg9: memref<4x8x32xbf16, #tpu.memory_space<vmem>>, %arg10: memref<1x32xf32, #tpu.memory_space<vmem>>, %arg11: memref<1x8x32xf32, #tpu.memory_space<vmem>>) attributes {dimension_semantics = [#tpu.dimension_semantics<parallel>], iteration_bounds = array<i64: 2>, scalar_prefetch = 0 : i64, scratch_operands = 0 : i64, tpu.core_type = #tpu.core_type<tc>, window_params = [{transform_indices = @transform_0, window_bounds = array<i64: 1, 8, 32>}, {transform_indices = @transform_1, window_bounds = array<i64: 1, 1, 8>}, {pipeline_mode = #tpu.pipeline_mode<synchronous>, transform_indices = @transform_2, window_bounds = array<i64: 4, 32, 8>}, {pipeline_mode = #tpu.pipeline_mode<synchronous>, transform_indices = @transform_3, window_bounds = array<i64: 4, 1, 8>}, {pipeline_mode = #tpu.pipeline_mode<synchronous>, transform_indices = @transform_4, window_bounds = array<i64: 4, 32, 8>}, {pipeline_mode = #tpu.pipeline_mode<synchronous>, transform_indices = @transform_5, window_bounds = array<i64: 4, 1, 8>}, {pipeline_mode = #tpu.pipeline_mode<synchronous>, transform_indices = @transform_6, window_bounds = array<i64: 4, 32, 8>}, {pipeline_mode = #tpu.pipeline_mode<synchronous>, transform_indices = @transform_7, window_bounds = array<i64: 4, 1, 8>}, {pipeline_mode = #tpu.pipeline_mode<synchronous>, transform_indices = @transform_8, window_bounds = array<i64: 4, 8, 32>}, {pipeline_mode = #tpu.pipeline_mode<synchronous>, transform_indices = @transform_9, window_bounds = array<i64: 1, 32>}, {transform_indices = @transform_10, window_bounds = array<i64: 1, 8, 32>}]} {
    %c0 = arith.constant 0 : index
    %c0_0 = arith.constant 0 : index
    %c0_1 = arith.constant 0 : index
    %0 = vector.load %arg1[%c0, %c0_0, %c0_1] : memref<1x8x32xf32, #tpu.memory_space<vmem>>, vector<1x8x32xf32>
    %1 = vector.shape_cast %0 : vector<1x8x32xf32> to vector<8x32xf32>
    %c0_2 = arith.constant 0 : index
    %c0_3 = arith.constant 0 : index
    %c0_4 = arith.constant 0 : index
    %2 = vector.load %arg2[%c0_2, %c0_3, %c0_4] : memref<1x1x8xf32, #tpu.memory_space<vmem>>, vector<1x1x8xf32>
    %3 = vector.shape_cast %2 : vector<1x1x8xf32> to vector<8xf32>
    %4 = arith.truncf %1 : vector<8x32xf32> to vector<8x32xbf16>
    %5 = vector.shape_cast %4 : vector<8x32xbf16> to vector<1x8x32xbf16>
    %6 = vector.shape_cast %5 : vector<1x8x32xbf16> to vector<1x8x32xbf16>
    %7 = vector.broadcast %6 : vector<1x8x32xbf16> to vector<4x8x32xbf16>
    %c0_5 = arith.constant 0 : index
    %c0_6 = arith.constant 0 : index
    %c0_7 = arith.constant 0 : index
    %8 = vector.load %arg3[%c0_5, %c0_6, %c0_7] : memref<4x32x8xbf16, #tpu.memory_space<vmem>>, vector<4x32x8xbf16>
    %cst = arith.constant dense<0.000000e+00> : vector<4x8x8xf32>
    %9 = tpu.matmul %7, %8, %cst {dimension_numbers = #tpu.dot_dimension_numbers<[2], [1], [1], [2], [0, 0, 0, 1, 1, 2], [0], [0]>} : vector<4x8x32xbf16>, vector<4x32x8xbf16>, vector<4x8x8xf32> -> vector<4x8x8xf32>
    %c0_8 = arith.constant 0 : index
    %c0_9 = arith.constant 0 : index
    %c0_10 = arith.constant 0 : index
    %10 = vector.load %arg4[%c0_8, %c0_9, %c0_10] : memref<4x1x8xf32, #tpu.memory_space<vmem>>, vector<4x1x8xf32>
    %11 = vector.broadcast %10 : vector<4x1x8xf32> to vector<4x8x8xf32>
    %12 = arith.addf %9, %11 : vector<4x8x8xf32>
    %cst_11 = arith.constant 0.176776692 : f32
    %13 = vector.broadcast %cst_11 : f32 to vector<4x8x8xf32>
    %14 = arith.mulf %12, %13 : vector<4x8x8xf32>
    %c0_12 = arith.constant 0 : index
    %c0_13 = arith.constant 0 : index
    %c0_14 = arith.constant 0 : index
    %15 = vector.load %arg5[%c0_12, %c0_13, %c0_14] : memref<4x32x8xbf16, #tpu.memory_space<vmem>>, vector<4x32x8xbf16>
    %cst_15 = arith.constant dense<0.000000e+00> : vector<4x8x8xf32>
    %16 = tpu.matmul %7, %15, %cst_15 {dimension_numbers = #tpu.dot_dimension_numbers<[2], [1], [1], [2], [0, 0, 0, 1, 1, 2], [0], [0]>} : vector<4x8x32xbf16>, vector<4x32x8xbf16>, vector<4x8x8xf32> -> vector<4x8x8xf32>
    %c0_16 = arith.constant 0 : index
    %c0_17 = arith.constant 0 : index
    %c0_18 = arith.constant 0 : index
    %17 = vector.load %arg6[%c0_16, %c0_17, %c0_18] : memref<4x1x8xf32, #tpu.memory_space<vmem>>, vector<4x1x8xf32>
    %18 = vector.broadcast %17 : vector<4x1x8xf32> to vector<4x8x8xf32>
    %19 = arith.addf %16, %18 : vector<4x8x8xf32>
    %c0_19 = arith.constant 0 : index
    %c0_20 = arith.constant 0 : index
    %c0_21 = arith.constant 0 : index
    %20 = vector.load %arg7[%c0_19, %c0_20, %c0_21] : memref<4x32x8xbf16, #tpu.memory_space<vmem>>, vector<4x32x8xbf16>
    %cst_22 = arith.constant dense<0.000000e+00> : vector<4x8x8xf32>
    %21 = tpu.matmul %7, %20, %cst_22 {dimension_numbers = #tpu.dot_dimension_numbers<[2], [1], [1], [2], [0, 0, 0, 1, 1, 2], [0], [0]>} : vector<4x8x32xbf16>, vector<4x32x8xbf16>, vector<4x8x8xf32> -> vector<4x8x8xf32>
    %c0_23 = arith.constant 0 : index
    %c0_24 = arith.constant 0 : index
    %c0_25 = arith.constant 0 : index
    %22 = vector.load %arg8[%c0_23, %c0_24, %c0_25] : memref<4x1x8xf32, #tpu.memory_space<vmem>>, vector<4x1x8xf32>
    %23 = vector.broadcast %22 : vector<4x1x8xf32> to vector<4x8x8xf32>
    %24 = arith.addf %21, %23 : vector<4x8x8xf32>
    %25 = vector.shape_cast %3 : vector<8xf32> to vector<8x1xf32>
    %26 = vector.shape_cast %3 : vector<8xf32> to vector<1x8xf32>
    %27 = vector.broadcast %25 : vector<8x1xf32> to vector<8x8xf32>
    %28 = vector.broadcast %26 : vector<1x8xf32> to vector<8x8xf32>
    %29 = arith.mulf %27, %28 : vector<8x8xf32>
    %cst_26 = arith.constant 0.000000e+00 : f32
    %30 = vector.broadcast %cst_26 : f32 to vector<8x8xf32>
    %31 = arith.cmpf oeq, %29, %30 : vector<8x8xf32>
    %cst_27 = arith.constant -9.99999995E+11 : f32
    %cst_28 = arith.constant 0.000000e+00 : f32
    %32 = vector.broadcast %cst_27 : f32 to vector<8x8xf32>
    %33 = vector.broadcast %cst_28 : f32 to vector<8x8xf32>
    %34 = arith.select %31, %32, %33 : vector<8x8xi1>, vector<8x8xf32>
    %35 = arith.truncf %14 : vector<4x8x8xf32> to vector<4x8x8xbf16>
    %36 = arith.truncf %19 : vector<4x8x8xf32> to vector<4x8x8xbf16>
    %cst_29 = arith.constant dense<0.000000e+00> : vector<4x8x8xf32>
    %37 = tpu.matmul %35, %36, %cst_29 {dimension_numbers = #tpu.dot_dimension_numbers<[2], [2], [1], [1], [0, 0, 0, 1, 1, 1], [0], [0]>} : vector<4x8x8xbf16>, vector<4x8x8xbf16>, vector<4x8x8xf32> -> vector<4x8x8xf32>
    %38 = vector.shape_cast %34 : vector<8x8xf32> to vector<1x8x8xf32>
    %39 = vector.broadcast %38 : vector<1x8x8xf32> to vector<4x8x8xf32>
    %40 = arith.addf %37, %39 : vector<4x8x8xf32>
    %cst_30 = arith.constant dense<0xFF800000> : vector<4x8xf32>
    %41 = vector.multi_reduction <maximumf>, %40, %cst_30 [2] : vector<4x8x8xf32> to vector<4x8xf32>
    %42 = vector.shape_cast %41 : vector<4x8xf32> to vector<4x8x1xf32>
    %43 = vector.broadcast %42 : vector<4x8x1xf32> to vector<4x8x8xf32>
    %44 = arith.subf %40, %43 : vector<4x8x8xf32>
    %45 = math.exp %44 : vector<4x8x8xf32>
    %cst_31 = arith.constant dense<0.000000e+00> : vector<4x8xf32>
    %46 = vector.multi_reduction <add>, %45, %cst_31 [2] : vector<4x8x8xf32> to vector<4x8xf32>
    %47 = vector.shape_cast %46 : vector<4x8xf32> to vector<4x8x1xf32>
    %48 = tpu.reciprocal %47 {approx = true} : vector<4x8x1xf32> -> vector<4x8x1xf32>
    %49 = vector.broadcast %48 : vector<4x8x1xf32> to vector<4x8x8xf32>
    %50 = arith.mulf %45, %49 : vector<4x8x8xf32>
    %51 = arith.truncf %50 : vector<4x8x8xf32> to vector<4x8x8xbf16>
    %52 = arith.truncf %24 : vector<4x8x8xf32> to vector<4x8x8xbf16>
    %cst_32 = arith.constant dense<0.000000e+00> : vector<4x8x8xf32>
    %53 = tpu.matmul %51, %52, %cst_32 {dimension_numbers = #tpu.dot_dimension_numbers<[2], [1], [1], [2], [0, 0, 0, 1, 1, 2], [0], [0]>} : vector<4x8x8xbf16>, vector<4x8x8xbf16>, vector<4x8x8xf32> -> vector<4x8x8xf32>
    %54 = arith.truncf %53 : vector<4x8x8xf32> to vector<4x8x8xbf16>
    %c0_33 = arith.constant 0 : index
    %c0_34 = arith.constant 0 : index
    %c0_35 = arith.constant 0 : index
    %55 = vector.load %arg9[%c0_33, %c0_34, %c0_35] : memref<4x8x32xbf16, #tpu.memory_space<vmem>>, vector<4x8x32xbf16>
    %cst_36 = arith.constant dense<0.000000e+00> : vector<4x8x32xf32>
    %56 = tpu.matmul %54, %55, %cst_36 {dimension_numbers = #tpu.dot_dimension_numbers<[2], [1], [1], [2], [0, 0, 0, 1, 1, 2], [0], [0]>} : vector<4x8x8xbf16>, vector<4x8x32xbf16>, vector<4x8x32xf32> -> vector<4x8x32xf32>
    %cst_37 = arith.constant dense<0.000000e+00> : vector<8x32xf32>
    %57 = vector.multi_reduction <add>, %56, %cst_37 [0] : vector<4x8x32xf32> to vector<8x32xf32>
    %c0_38 = arith.constant 0 : index
    %c0_39 = arith.constant 0 : index
    %58 = vector.load %arg10[%c0_38, %c0_39] : memref<1x32xf32, #tpu.memory_space<vmem>>, vector<1x32xf32>
    %59 = vector.broadcast %58 : vector<1x32xf32> to vector<8x32xf32>
    %60 = arith.addf %57, %59 : vector<8x32xf32>
    %c0_40 = arith.constant 0 : index
    %c0_41 = arith.constant 0 : index
    %c0_42 = arith.constant 0 : index
    %61 = vector.load %arg11[%c0_40, %c0_41, %c0_42] : memref<1x8x32xf32, #tpu.memory_space<vmem>>, vector<1x8x32xf32>
    %62 = vector.shape_cast %61 : vector<1x8x32xf32> to vector<8x32xf32>
    %63 = vector.shape_cast %60 : vector<8x32xf32> to vector<1x8x32xf32>
    tpu.vector_store %arg11[%c0_40, %c0_41, %c0_42], %63 {strides = array<i32>} : memref<1x8x32xf32, #tpu.memory_space<vmem>>, vector<1x8x32xf32>,
    return
  }
  func.func @transform_0(%arg0: i32) -> (i32, i32, i32) {
    %c0_i32 = arith.constant 0 : i32
    %c0_i32_0 = arith.constant 0 : i32
    %c0_i32_1 = arith.constant 0 : i32
    return %arg0, %c0_i32, %c0_i32_0 : i32, i32, i32
  }
  func.func @transform_1(%arg0: i32) -> (i32, i32, i32) {
    %c0_i32 = arith.constant 0 : i32
    %c0_i32_0 = arith.constant 0 : i32
    %c0_i32_1 = arith.constant 0 : i32
    return %arg0, %c0_i32, %c0_i32_0 : i32, i32, i32
  }
  func.func @transform_2(%arg0: i32) -> (i32, i32, i32) {
    %c0_i32 = arith.constant 0 : i32
    %c0_i32_0 = arith.constant 0 : i32
    %c0_i32_1 = arith.constant 0 : i32
    %c0_i32_2 = arith.constant 0 : i32
    return %c0_i32, %c0_i32_0, %c0_i32_1 : i32, i32, i32
  }
  func.func @transform_3(%arg0: i32) -> (i32, i32, i32) {
    %c0_i32 = arith.constant 0 : i32
    %c0_i32_0 = arith.constant 0 : i32
    %c0_i32_1 = arith.constant 0 : i32
    %c0_i32_2 = arith.constant 0 : i32
    return %c0_i32, %c0_i32_0, %c0_i32_1 : i32, i32, i32
  }
  func.func @transform_4(%arg0: i32) -> (i32, i32, i32) {
    %c0_i32 = arith.constant 0 : i32
    %c0_i32_0 = arith.constant 0 : i32
    %c0_i32_1 = arith.constant 0 : i32
    %c0_i32_2 = arith.constant 0 : i32
    return %c0_i32, %c0_i32_0, %c0_i32_1 : i32, i32, i32
  }
  func.func @transform_5(%arg0: i32) -> (i32, i32, i32) {
    %c0_i32 = arith.constant 0 : i32
    %c0_i32_0 = arith.constant 0 : i32
    %c0_i32_1 = arith.constant 0 : i32
    %c0_i32_2 = arith.constant 0 : i32
    return %c0_i32, %c0_i32_0, %c0_i32_1 : i32, i32, i32
  }
  func.func @transform_6(%arg0: i32) -> (i32, i32, i32) {
    %c0_i32 = arith.constant 0 : i32
    %c0_i32_0 = arith.constant 0 : i32
    %c0_i32_1 = arith.constant 0 : i32
    %c0_i32_2 = arith.constant 0 : i32
    return %c0_i32, %c0_i32_0, %c0_i32_1 : i32, i32, i32
  }
  func.func @transform_7(%arg0: i32) -> (i32, i32, i32) {
    %c0_i32 = arith.constant 0 : i32
    %c0_i32_0 = arith.constant 0 : i32
    %c0_i32_1 = arith.constant 0 : i32
    %c0_i32_2 = arith.constant 0 : i32
    return %c0_i32, %c0_i32_0, %c0_i32_1 : i32, i32, i32
  }
  func.func @transform_8(%arg0: i32) -> (i32, i32, i32) {
    %c0_i32 = arith.constant 0 : i32
    %c0_i32_0 = arith.constant 0 : i32
    %c0_i32_1 = arith.constant 0 : i32
    %c0_i32_2 = arith.constant 0 : i32
    return %c0_i32, %c0_i32_0, %c0_i32_1 : i32, i32, i32
  }
  func.func @transform_9(%arg0: i32) -> (i32, i32) {
    %c0_i32 = arith.constant 0 : i32
    %c0_i32_0 = arith.constant 0 : i32
    %c0_i32_1 = arith.constant 0 : i32
    return %c0_i32, %c0_i32_0 : i32, i32
  }
  func.func @transform_10(%arg0: i32) -> (i32, i32, i32) {
    %c0_i32 = arith.constant 0 : i32
    %c0_i32_0 = arith.constant 0 : i32
    %c0_i32_1 = arith.constant 0 : i32
    return %arg0, %c0_i32, %c0_i32_0 : i32, i32, i32
  }
}

</mosaic_0001>

<bundles_post_ra>
// kernel: tpu_custom_call.1
= control target key start
LH: loop header
LB: loop body
LE: loop exit
PB: predicated region body
PF: predicated region fallthrough
CT: control target
= control target key end

     0   :  { %15 = vsyncpa [#allocation3], 0  ;;  %s1798_s0 = inlined_call_operand.vmem [shape: f32[2,8,32], index: 0, kind: input, shape index: {}]   ;;  %s1799_s1 = inlined_call_operand.vmem [shape: f32[2,1,8], index: 1, kind: input, shape index: {}]   ;;  %s1800_s2 = inlined_call_operand.vmem [shape: bf16[4,32,8], index: 2, kind: input, shape index: {}]   ;;  %s1801_s3 = inlined_call_operand.vmem [shape: f32[4,1,8], index: 3, kind: input, shape index: {}]   ;;  %s1802_s4 = inlined_call_operand.vmem [shape: bf16[4,32,8], index: 4, kind: input, shape index: {}]   ;;  %s1803_s5 = inlined_call_operand.vmem [shape: f32[4,1,8], index: 5, kind: input, shape index: {}]   ;;  %s1804_s6 = inlined_call_operand.vmem [shape: bf16[4,32,8], index: 6, kind: input, shape index: {}]   ;;  %s1805_s7 = inlined_call_operand.vmem [shape: f32[4,1,8], index: 7, kind: input, shape index: {}]   ;;  %s1806_s8 = inlined_call_operand.vmem [shape: bf16[4,8,32], index: 8, kind: input, shape index: {}]   ;;  %s1807_s9 = inlined_call_operand.vmem [shape: f32[1,32], index: 9, kind: input, shape index: {}]   ;;  %s1808_s10 = inlined_call_operand.hbm [shape: f32[2,8,32], index: 10, kind: output, shape index: {}]  }
   0x1   :  { %17 = vsyncpa [#allocation3 + $0x1], 0  ;;  %s1530_s13 = smov 0   ;;  %s1532_s14 = smov 0  }
   0x2   :  { %s1534_s15 = smov 0   ;;  %s1536_s16 = smov 0  }
   0x3 LB: > { %1812 = sst [smem:[#allocation5_spill]] %s1468_s15  ;;  %s1551_s17 = sadd.s32 4294967295, %s1472_s16   ;;  %s1472_s16 = sphi %s1536_s16, %s1817_s16   ;;  %s1468_s15 = sphi %s1534_s15, %s1819_s15   ;;  %s1464_s14 = sphi %s1532_s14, %s1821_s14   ;;  %s1460_s13 = sphi %s1530_s13, %s1820_s13  }
   0x4   : > { %s1185_s18 = sadd.s32 4294967294, %s1472_s16   ;;  %s1555_s19 = sadd.s32 1, %s1472_s16  }
   0x5   : > { %1813 = sst [smem:[#allocation6_spill]] %s1555_s19  ;;  %s250_s20 = sadd.s32 1, %s1468_s15 }
   0x6   : > { %s247_s21 = ssub.s32 %s1472_s16, %s1555_s19  ;;  %p260_p0 = scmp.ne.s32.totalorder %s1468_s15, %s1464_s14 }
   0x7   : > { %p248_p1 = scmp.eq.s32.totalorder %s247_s21, 0  ;;  %p261_p2 = scmp.eq.s32.totalorder %s1551_s17, 1 }
   0x8   : > { %p266_p3 = scmp.ne.s32.totalorder %s1464_s14, %s1460_s13  ;;  %p267_p4 = scmp.eq.s32.totalorder %s1185_s18, 1 }
   0x9   : > { %s1566_s22 = scalar_select %p248_p1, %s1468_s15, %s250_s20  }
   0xa   : > { %p1568_p5 = por %p261_p2, %p260_p0  ;;  %p1572_p6 = por %p267_p4, %p266_p3 }
   0xb   : > { %1814 = sst [smem:[#allocation7_spill]] %s1566_s22  ;;  %p1188_p7 = scmp.ge.s32.totalorder %s1472_s16, 1 }
   0xc   : > { %p322_p8 = scmp.lt.s32.totalorder %s1472_s16, 3 }
   0xe   : > { %p323_p9 = pnand %p1188_p7, %p322_p8 }
   0xf   : > { %p362_p10 = scmp.lt.s32.totalorder (!%p323_p9), %s1551_s17, 1  ;;  %s359_s19 = sand.u32 (!%p323_p9), 1, %s1464_s14  }
  0x10   : > { %326 = sbr.rel (%p323_p9) target bundleno = 858 (0x35a), region = 60  ;;  %s1102_s12 = scalar_lea.sflag (!%p323_p9), [#allocation3], %s359_s19 }
  0x15   : > { %v1316_v0 = vld [vmem:[%s1800_s2 + $0x8] sm:$0xff]  ;;  %v1318_v1 = vld [vmem:[%s1800_s2 + $0x18] sm:$0xff]  ;;  %v1315_v4 = vld [vmem:[%s1800_s2] sm:$0xff]  ;;  %s1598_s26 = scalar_select %p362_p10, %s1551_s17, 1  ;;  %vm417_vm0 = vcmask 261120   ;;  %v778_v26 = vlaneseq  ;;  %vm798_vm1 = vcmask 64512  }
  0x16   : > { %v1320_v2 = vld [vmem:[%s1800_s2 + $0x28] sm:$0xff]  ;;  %v1322_v3 = vld [vmem:[%s1800_s2 + $0x38] sm:$0xff]  ;;  %427 = vmatpush.bf16.msra.mxu0 %v1316_v0  ;;  %452 = vmatpush.bf16.msra.mxu1 %v1318_v1  ;;  %v1317_v5 = vld [vmem:[%s1800_s2 + $0x10] sm:$0xff]  ;;  %vm930_vm2 = vcmask 1043456  }
  0x17   : > { %477 = vmatpush.bf16.msra.mxu2 %v1320_v2  ;;  %502 = vmatpush.bf16.msra.mxu3 %v1322_v3  ;;  %v1319_v6 = vld [vmem:[%s1800_s2 + $0x20] sm:$0xff]  ;;  %v1321_v7 = vld [vmem:[%s1800_s2 + $0x30] sm:$0xff]  ;;  %s1190_s11 = sshll.u32 %s1598_s26, 3  ;;  %v1324_v8 = vld [vmem:[%s1802_s4 + $0x8] sm:$0xff]  ;;  %s368_s27 = scalar_lea.vmem %s1799_s1, %s1598_s26  ;;  %v779_v27 = vshrl.u32 %v778_v26, 7 }
  0x18   : > { %v1326_v9 = vld [vmem:[%s1802_s4 + $0x18] sm:$0xff]  ;;  %s365_s15 = scalar_lea.vmem %s1798_s0, %s1190_s11  ;;  %v1328_v10 = vld [vmem:[%s1802_s4 + $0x28] sm:$0xff]  ;;  %v1323_v13 = vld [vmem:[%s1802_s4] sm:$0xff]  ;;  %s1189_s26 = sshll.u32 %s359_s19, 3 }
  0x19   : > { %v1330_v11 = vld [vmem:[%s1802_s4 + $0x38] sm:$0xff]  ;;  %v370_v12 = vld [vmem:[%s365_s15] sm:$0xff]  ;;  %v1325_v14 = vld [vmem:[%s1802_s4 + $0x10] sm:$0xff]  ;;  %1379 = vset.pattern.permute.xlu0 %v779_v27  ;;  %s361_s29 = scalar_lea.vmem [#allocation2], %s1189_s26 }
  0x1a   : > { %428 = vmatpush.bf16.msra.mxu0 %v1315_v4  ;;  %453 = vmatpush.bf16.msra.mxu1 %v1317_v5  ;;  %v372_v15 = vpack.c.bf16 %v370_v12, %v370_v12  ;;  %v1327_v16 = vld [vmem:[%s1802_s4 + $0x20] sm:$0xff]  ;;  %v1329_v17 = vld [vmem:[%s1802_s4 + $0x30] sm:$0xff]  ;;  %v1336_v18 = vld [vmem:[%s1804_s6 + $0x28] sm:$0xff] }
  0x1b   : > { %478 = vmatpush.bf16.msra.mxu2 %v1319_v6  ;;  %503 = vmatpush.bf16.msra.mxu3 %v1321_v7  ;;  %v1338_v19 = vld [vmem:[%s1804_s6 + $0x38] sm:$0xff]  ;;  %v1332_v20 = vld [vmem:[%s1804_s6 + $0x8] sm:$0xff]  ;;  %v1335_v22 = vld [vmem:[%s1804_s6 + $0x20] sm:$0xff] }
  0x1c   : > { %v1334_v21 = vld [vmem:[%s1804_s6 + $0x18] sm:$0xff]  ;;  %v1337_v23 = vld [vmem:[%s1804_s6 + $0x30] sm:$0xff]  ;;  %v1331_v24 = vld [vmem:[%s1804_s6] sm:$0xff] }
  0x1d   : > { %1199 = vmatmul.msk.bf16.vlgmr.msra.gmra.mxu0 %vm417_vm0, %v372_v15  ;;  %1208 = vmatmul.msk.bf16.vlgmr.msra.gmra.mxu1 %vm417_vm0, %v372_v15  ;;  %v1333_v25 = vld [vmem:[%s1804_s6 + $0x10] sm:$0xff]  ;;  %v1674_v30 = vld [vmem:[%s368_s27] ss:$0 sm:$0xff]  ;;  %v1381_v36 = vld [vmem:[%s1801_s3 + $0x1] ss:$0 sm:$0xff]  ;;  %s1312_s27 = sshll.u32 %s1551_s17, 3 }
  0x1e   : > { %563 = vmatpush.bf16.msrb.mxu0 %v1324_v8  ;;  %588 = vmatpush.bf16.msrb.mxu1 %v1326_v9  ;;  %v1380_v35 = vld [vmem:[%s1801_s3] ss:$0 sm:$0xff]  ;;  %v1385_v38 = vld [vmem:[%s1803_s5 + $0x1] ss:$0 sm:$0xff]  ;;  %v1386_v49 = vld [vmem:[%s1803_s5 + $0x2] ss:$0 sm:$0xff]  ;;  %s1112_s21 = scalar_lea.hbm %s1808_s10, %s1312_s27 }
  0x1f   : > { %1217 = vmatmul.msk.bf16.vlgmr.msra.gmra.mxu2 %vm417_vm0, %v372_v15  ;;  %1226 = vmatmul.msk.bf16.vlgmr.msra.gmra.mxu3 %vm417_vm0, %v372_v15  ;;  %v1384_v37 = vld [vmem:[%s1803_s5] ss:$0 sm:$0xff]  ;;  %v1387_v50 = vld [vmem:[%s1803_s5 + $0x3] ss:$0 sm:$0xff]  ;;  %v1382_v55 = vld [vmem:[%s1801_s3 + $0x2] ss:$0 sm:$0xff] }
  0x20   : > { %613 = vmatpush.bf16.msrb.mxu2 %v1328_v10  ;;  %638 = vmatpush.bf16.msrb.mxu3 %v1330_v11  ;;  %v1383_v56 = vld [vmem:[%s1801_s3 + $0x3] ss:$0 sm:$0xff]  ;;  %s1114_s17 = sshll.u32 %s361_s29, 4  ;;  %s1116_s30 = sshll.u32 %s1112_s21, 4  ;;  %s1115_s17 = int_to_ptr.vmem [resolvable:$true] %s1114_s17  ;;  %s1117_s30 = int_to_ptr.hbm [resolvable:$true] %s1116_s30 }
  0x21   : > { %782 = vperm.xlu0 %1379, %v1674_v30   ;;  %s1424_s18 = sshra.s32 %s1117_s30, 4  ;;  %s1430_s27 = scalar_lea.hbm %s1808_s10, 16  ;;  %s1425_s18 = int_to_ptr.hbm [resolvable:$true] %s1424_s18 }
  0x22   : > { %564 = vmatpush.bf16.msrb.mxu0 %v1323_v13  ;;  %589 = vmatpush.bf16.msrb.mxu1 %v1325_v14  ;;  %v1389_v13 = vld [vmem:[%s1805_s7] ss:$0 sm:$0xff]  ;;  %v1390_v14 = vld [vmem:[%s1805_s7 + $0x1] ss:$0 sm:$0xff]  ;;  %s1426_s20 = scalar_lea.hbm %s1425_s18, 8  ;;  %p1431_p0 = scmp.lt.s32.totalorder %s1425_s18, %s1808_s10 }
  0x23   : > { %p1427_p11 = scmp.ne.s32.totalorder %s1425_s18, %s1426_s20  ;;  %p1432_p1 = scmp.lt.s32.totalorder %s1430_s27, %s1426_s20 }
  0x24   : > { %614 = vmatpush.bf16.msrb.mxu2 %v1327_v16  ;;  %639 = vmatpush.bf16.msrb.mxu3 %v1329_v17 }
  0x25   : > { %p1428_p12 = pnand %p1427_p11, %p1568_p5  ;;  %p1433_p2 = por %p1432_p1, %p1431_p0 }
  0x26   : > { %695 = vmatpush.bf16.msra.mxu0 %v1332_v20  ;;  %720 = vmatpush.bf16.msra.mxu1 %v1334_v21  ;;  %v1392_v20 = vld [vmem:[%s1805_s7 + $0x3] ss:$0 sm:$0xff] }
  0x27   : > { %p1429_p13 = pneg %p1428_p12 }
  0x28   : > { %745 = vmatpush.bf16.msra.mxu2 %v1336_v18  ;;  %770 = vmatpush.bf16.msra.mxu3 %v1338_v19  ;;  %v1391_v18 = vld [vmem:[%s1805_s7 + $0x2] ss:$0 sm:$0xff] }
  0x29   : > { %p1434_p3 = pnand %p1433_p2, %p1429_p13 }
  0x2a   : > { %696 = vmatpush.bf16.msra.mxu0 %v1331_v24  ;;  %721 = vmatpush.bf16.msra.mxu1 %v1333_v25 }
  0x2c   : > { %746 = vmatpush.bf16.msra.mxu2 %v1335_v22  ;;  %771 = vmatpush.bf16.msra.mxu3 %v1337_v23 }
  0x2d   : > { %1235 = vmatmul.msk.bf16.vlgmr.msrb.gmra.mxu0 %vm417_vm0, %v372_v15  ;;  %1244 = vmatmul.msk.bf16.vlgmr.msrb.gmra.mxu1 %vm417_vm0, %v372_v15 }
  0x2f   : > { %1253 = vmatmul.msk.bf16.vlgmr.msrb.gmra.mxu2 %vm417_vm0, %v372_v15  ;;  %1262 = vmatmul.msk.bf16.vlgmr.msrb.gmra.mxu3 %vm417_vm0, %v372_v15 }
  0x3d   : > { %1271 = vmatmul.msk.bf16.vlgmr.msra.gmra.mxu0 %vm417_vm0, %v372_v15  ;;  %1280 = vmatmul.msk.bf16.vlgmr.msra.gmra.mxu1 %vm417_vm0, %v372_v15 }
  0x3f   : > { %1289 = vmatmul.msk.bf16.vlgmr.msra.gmra.mxu2 %vm417_vm0, %v372_v15  ;;  %1298 = vmatmul.msk.bf16.vlgmr.msra.gmra.mxu3 %vm417_vm0, %v372_v15 }
  0x9a   : > { %v430_v28 = vpop.f32.mrf.mxu0  ;;  %v455_v29 = vpop.f32.mrf.mxu1 }
  0x9b   : > { %v431_v43 = vadd.f32 %v1380_v35, %v430_v28  ;;  %v456_v44 = vadd.f32 %v1381_v36, %v455_v29 }
  0x9d   : > { %v509_v51 = vmul.f32 0.17677669, %v431_v43  ;;  %v510_v52 = vmul.f32 0.17677669, %v456_v44 }
  0x9f   : > { %v790_v63 = vpack.c.bf16 %v509_v51, %v509_v51  ;;  %v791_v0 = vpack.c.bf16 %v510_v52, %v510_v52 }
  0xa2   : > { %v480_v31 = vpop.f32.mrf.mxu2  ;;  %v505_v32 = vpop.f32.mrf.mxu3 }
  0xa3   : > { %v432_v33 = vpop.f32.mrf.mxu0  ;;  %v457_v34 = vpop.f32.mrf.mxu1  ;;  %v481_v1 = vadd.f32 %v1382_v55, %v480_v31  ;;  %v506_v2 = vadd.f32 %v1383_v56, %v505_v32 }
  0xa5   : > { %v511_v7 = vmul.f32 0.17677669, %v481_v1  ;;  %v512_v8 = vmul.f32 0.17677669, %v506_v2 }
  0xa7   : > { %v792_v11 = vpack.c.bf16 %v511_v7, %v511_v7  ;;  %v793_v12 = vpack.c.bf16 %v512_v8, %v512_v8 }
  0xaa   : > { %v482_v39 = vpop.f32.mrf.mxu2  ;;  %v507_v40 = vpop.f32.mrf.mxu3 }
  0xab   : > { %v566_v41 = vpop.f32.mrf.mxu0  ;;  %v591_v42 = vpop.f32.mrf.mxu1  ;;  %v1474_v40 = vmov 0.0  }
  0xac   : > { %v567_v45 = vadd.f32 %v1384_v37, %v566_v41  ;;  %v592_v46 = vadd.f32 %v1385_v38, %v591_v42  ;;  %v783_v38 = vpop.permute.xlu0 %782 }
  0xad   : > { %v787_v39 = vmul.f32 %v1674_v30, %v783_v38 }
  0xae   : > { %v794_v47 = vpack.c.bf16 %v567_v45, %v567_v45  ;;  %v795_v48 = vpack.c.bf16 %v592_v46, %v592_v46 }
  0xaf   : > { %vm788_vm3 = vcmp.eq.f32.partialorder %v787_v39, 0.0 }
  0xb0   : > { %v803_v53 = vsel %vm798_vm1, %v794_v47, 0  ;;  %v822_v54 = vsel %vm798_vm1, %v795_v48, 0  ;;  %v789_v41 = vsel %vm788_vm3, -1e+12, %v1474_v40 }
  0xb1   : > { %812 = vmatpush.bf16.xpose.msrb.mxu0 %v803_v53  ;;  %831 = vmatpush.bf16.xpose.msrb.mxu1 %v822_v54 }
  0xb2   : > { %v616_v57 = vpop.f32.mrf.mxu2  ;;  %v641_v58 = vpop.f32.mrf.mxu3 }
  0xb3   : > { %v617_v59 = vadd.f32 %v1386_v49, %v616_v57  ;;  %v642_v60 = vadd.f32 %v1387_v50, %v641_v58  ;;  %v568_v61 = vpop.f32.mrf.mxu0  ;;  %v593_v62 = vpop.f32.mrf.mxu1 }
  0xb5   : > { %v796_v3 = vpack.c.bf16 %v617_v59, %v617_v59  ;;  %v797_v4 = vpack.c.bf16 %v642_v60, %v642_v60 }
  0xb7   : > { %v841_v5 = vsel %vm798_vm1, %v796_v3, 0  ;;  %v860_v6 = vsel %vm798_vm1, %v797_v4, 0 }
  0xb8   : > { %850 = vmatpush.bf16.xpose.msrb.mxu2 %v841_v5  ;;  %869 = vmatpush.bf16.xpose.msrb.mxu3 %v860_v6 }
  0xb9   : > { %1299 = vmatmul.msk.bf16.vlgmr.msrb.gmra.mxu0 %vm798_vm1, %v790_v63  ;;  %1300 = vmatmul.msk.bf16.vlgmr.msrb.gmra.mxu1 %vm798_vm1, %v791_v0 }
  0xba   : > { %v618_v9 = vpop.f32.mrf.mxu2  ;;  %v643_v10 = vpop.f32.mrf.mxu3 }
  0xbb   : > { %v698_v15 = vpop.f32.mrf.mxu0  ;;  %v723_v17 = vpop.f32.mrf.mxu1 }
  0xbc   : > { %v699_v16 = vadd.f32 %v1389_v13, %v698_v15  ;;  %v724_v19 = vadd.f32 %v1390_v14, %v723_v17  ;;  %v1010_v13 = vld [vmem:[%s1806_s8 + $0x8] sm:$0xf]  ;;  %v1011_v14 = vld [vmem:[%s1806_s8 + $0xc] sm:$0xf] }
  0xbd   : > { %v1054_v15 = vsel %vm930_vm2, %v1010_v13, 0 }
  0xbe   : > { %v923_v21 = vpack.c.bf16 %v699_v16, %v699_v16  ;;  %v924_v22 = vpack.c.bf16 %v724_v19, %v724_v19  ;;  %v1073_v16 = vsel %vm930_vm2, %v1011_v14, 0 }
  0xbf   : > { %1301 = vmatmul.msk.bf16.vlgmr.msrb.gmra.mxu2 %vm798_vm1, %v792_v11  ;;  %1302 = vmatmul.msk.bf16.vlgmr.msrb.gmra.mxu3 %vm798_vm1, %v793_v12 }
  0xc0   : > { %v932_v24 = vsel %vm930_vm2, %v923_v21, 0  ;;  %v951_v27 = vsel %vm930_vm2, %v924_v22, 0 }
  0xc1   : > { %941 = vmatpush.bf16.msra.mxu0 %v932_v24  ;;  %960 = vmatpush.bf16.msra.mxu1 %v951_v27 }
  0xc2   : > { %v748_v23 = vpop.f32.mrf.mxu2  ;;  %v773_v26 = vpop.f32.mrf.mxu3 }
  0xc3   : > { %v749_v25 = vadd.f32 %v1391_v18, %v748_v23  ;;  %v774_v28 = vadd.f32 %v1392_v20, %v773_v26  ;;  %v700_v31 = vpop.f32.mrf.mxu0  ;;  %v725_v33 = vpop.f32.mrf.mxu1 }
  0xc5   : > { %v925_v29 = vpack.c.bf16 %v749_v25, %v749_v25  ;;  %v926_v32 = vpack.c.bf16 %v774_v28, %v774_v28 }
  0xc7   : > { %v970_v34 = vsel %vm930_vm2, %v925_v29, 0  ;;  %v989_v35 = vsel %vm930_vm2, %v926_v32, 0 }
  0xc8   : > { %979 = vmatpush.bf16.msra.mxu2 %v970_v34  ;;  %998 = vmatpush.bf16.msra.mxu3 %v989_v35  ;;  %v1008_v34 = vld [vmem:[%s1806_s8] sm:$0xf]  ;;  %v1009_v35 = vld [vmem:[%s1806_s8 + $0x4] sm:$0xf] }
  0xca   : > { %v750_v36 = vpop.f32.mrf.mxu2  ;;  %v775_v37 = vpop.f32.mrf.mxu3 }
  0xcb   : > { %v1016_v36 = vsel %vm930_vm2, %v1008_v34, 0  ;;  %v1035_v37 = vsel %vm930_vm2, %v1009_v35, 0 }
  0xcc   : > { %1063 = vmatpush.bf16.msrb.mxu2 %v1054_v15  ;;  %1082 = vmatpush.bf16.msrb.mxu3 %v1073_v16 }
  0xcd   : > { %1025 = vmatpush.bf16.msrb.mxu0 %v1016_v36  ;;  %1044 = vmatpush.bf16.msrb.mxu1 %v1035_v37 }
 0x136   : > { %v814_v42 = vpop.f32.mrf.mxu0  ;;  %v833_v43 = vpop.f32.mrf.mxu1 }
 0x137   : > { %v834_v44 = vadd.f32 %v833_v43, %v789_v41  ;;  %v815_v30 = vadd.f32 %v814_v42, %v789_v41 }
 0x139   : > { %v878_v45 = vsel %vm798_vm1, %v834_v44, -inf  ;;  %v875_v56 = vsel %vm798_vm1, %v815_v30, -inf }
 0x13a   : > { %879 = vmax.xlane.f32.xlu2 %v878_v45 }
 0x13e   : > { %v816_v46 = vpop.f32.mrf.mxu0  ;;  %v835_v47 = vpop.f32.mrf.mxu1 }
 0x142   : > { %v852_v48 = vpop.f32.mrf.mxu2  ;;  %v871_v49 = vpop.f32.mrf.mxu3 }
 0x143   : > { %v853_v50 = vadd.f32 %v852_v48, %v789_v41  ;;  %v872_v51 = vadd.f32 %v871_v49, %v789_v41 }
 0x145   : > { %v884_v52 = vsel %vm798_vm1, %v872_v51, -inf  ;;  %v881_v53 = vsel %vm798_vm1, %v853_v50, -inf }
 0x146   : > { %885 = vmax.xlane.f32.xlu1 %v884_v52  ;;  %882 = vmax.xlane.f32.xlu0 %v881_v53 }
 0x14a   : > { %v854_v54 = vpop.f32.mrf.mxu2  ;;  %v873_v55 = vpop.f32.mrf.mxu3 }
 0x14e   : > { %876 = vmax.xlane.f32.xlu1 %v875_v56 }
 0x1ad   : > { %v880_v57 = vpop.xlane.xlu2 %879 }
 0x1ae   : > { %v888_v62 = vsub.f32 %v834_v44, %v880_v57 }
 0x1b0   : > { %v893_v1 = vmul.f32 1.442695, %v888_v62 }
 0x1b9   : > { %v886_v58 = vpop.xlane.xlu1 %885  ;;  %v883_v59 = vpop.xlane.xlu0 %882 }
 0x1ba   : > { %v890_v60 = vsub.f32 %v872_v51, %v886_v58  ;;  %v889_v61 = vsub.f32 %v853_v50, %v883_v59  ;;  %v1393_v58 = vld [vmem:[%s1807_s9] ss:$0 sm:$0xff] }
 0x1bc   : > { %v897_v63 = vmul.f32 1.442695, %v890_v60  ;;  %v895_v0 = vmul.f32 1.442695, %v889_v61 }
 0x1be   : > { %1394 = vpow2.f32 %v897_v63 }
 0x1bf   : > { %1396 = vpow2.f32 %v895_v0 }
 0x1c0   : > { %1398 = vpow2.f32 %v893_v1 }
 0x1c1   : > { %v877_v2 = vpop.xlane.xlu1 %876 }
 0x1c2   : > { %v887_v3 = vsub.f32 %v815_v30, %v877_v2 }
 0x1c4   : > { %v1395_v4 = vpop.eup %1394  ;;  %v891_v5 = vmul.f32 1.442695, %v887_v3 }
 0x1c5   : > { %v1397_v6 = vpop.eup %1396  ;;  %v908_v7 = vsel %vm798_vm1, %v1395_v4, 0.0 }
 0x1c6   : > { %1400 = vpow2.f32 %v891_v5  ;;  %v905_v8 = vsel %vm798_vm1, %v1397_v6, 0.0  ;;  %909 = vadd.xlane.f32.xlu1 %v908_v7  ;;  %v1399_v9 = vpop.eup %1398 }
 0x1c7   : > { %906 = vadd.xlane.f32.xlu2 %v905_v8  ;;  %v902_v11 = vsel %vm798_vm1, %v1399_v9, 0.0 }
 0x1cc   : > { %v1401_v10 = vpop.eup %1400 }
 0x1cd   : > { %v899_v12 = vsel %vm798_vm1, %v1401_v10, 0.0 }
 0x1ce   : > { %903 = vadd.xlane.f32.xlu1 %v902_v11 }
 0x1cf   : > { %900 = vadd.xlane.f32.xlu2 %v899_v12 }
 0x239   : > { %v910_v17 = vpop.xlane.xlu1 %909 }
 0x23a   : > { %v907_v18 = vpop.xlane.xlu2 %906  ;;  %1402 = vrcp.f32 %v910_v17 }
 0x23b   : > { %1404 = vrcp.f32 %v907_v18 }
 0x240   : > { %v1403_v19 = vpop.eup %1402 }
 0x241   : > { %v1405_v20 = vpop.eup %1404  ;;  %v918_v21 = vmul.f32 %v1403_v19, %v1395_v4  ;;  %v904_v22 = vpop.xlane.xlu1 %903 }
 0x242   : > { %v917_v23 = vmul.f32 %v1405_v20, %v1397_v6  ;;  %v901_v24 = vpop.xlane.xlu2 %900  ;;  %1406 = vrcp.f32 %v904_v22 }
 0x243   : > { %v922_v25 = vpack.c.bf16 %v918_v21, %v918_v21  ;;  %1408 = vrcp.f32 %v901_v24 }
 0x244   : > { %v921_v26 = vpack.c.bf16 %v917_v23, %v917_v23 }
 0x245   : > { %1306 = vmatmul.msk.bf16.vlgmr.msra.gmra.mxu3 %vm798_vm1, %v922_v25 }
 0x246   : > { %1305 = vmatmul.msk.bf16.vlgmr.msra.gmra.mxu2 %vm798_vm1, %v921_v26 }
 0x248   : > { %v1407_v27 = vpop.eup %1406 }
 0x249   : > { %v1409_v28 = vpop.eup %1408  ;;  %v916_v29 = vmul.f32 %v1407_v27, %v1399_v9 }
 0x24a   : > { %v915_v31 = vmul.f32 %v1409_v28, %v1401_v10 }
 0x24b   : > { %v920_v32 = vpack.c.bf16 %v916_v29, %v916_v29 }
 0x24c   : > { %v919_v33 = vpack.c.bf16 %v915_v31, %v915_v31 }
 0x24d   : > { %1304 = vmatmul.msk.bf16.vlgmr.msra.gmra.mxu1 %vm798_vm1, %v920_v32 }
 0x24e   : > { %1303 = vmatmul.msk.bf16.vlgmr.msra.gmra.mxu0 %vm798_vm1, %v919_v33 }
 0x2c8   : > { %v1000_v38 = vpop.f32.mrf.mxu3 }
 0x2c9   : > { %v981_v39 = vpop.f32.mrf.mxu2  ;;  %v1007_v40 = vpack.c.bf16 %v1000_v38, %v1000_v38 }
 0x2ca   : > { %v1006_v41 = vpack.c.bf16 %v981_v39, %v981_v39  ;;  %v962_v42 = vpop.f32.mrf.mxu1 }
 0x2cb   : > { %v943_v43 = vpop.f32.mrf.mxu0  ;;  %v1005_v44 = vpack.c.bf16 %v962_v42, %v962_v42  ;;  %1310 = vmatmul.msk.bf16.vlgmr.msrb.gmra.mxu3 %vm798_vm1, %v1007_v40 }
 0x2cc   : > { %v1004_v45 = vpack.c.bf16 %v943_v43, %v943_v43  ;;  %1309 = vmatmul.msk.bf16.vlgmr.msrb.gmra.mxu2 %vm798_vm1, %v1006_v41 }
 0x2cd   : > { %1308 = vmatmul.msk.bf16.vlgmr.msrb.gmra.mxu1 %vm798_vm1, %v1005_v44 }
 0x2ce   : > { %1307 = vmatmul.msk.bf16.vlgmr.msrb.gmra.mxu0 %vm798_vm1, %v1004_v45 }
 0x2d0   : > { %v1002_v46 = vpop.f32.mrf.mxu3 }
 0x2d1   : > { %v983_v47 = vpop.f32.mrf.mxu2 }
 0x2d2   : > { %v964_v48 = vpop.f32.mrf.mxu1 }
 0x2d3   : > { %v945_v49 = vpop.f32.mrf.mxu0 }
 0x34a   : > { %v1046_v50 = vpop.f32.mrf.mxu1 }
 0x34b   : > { %v1027_v51 = vpop.f32.mrf.mxu0  ;;  %v1089_v53 = vsel %vm417_vm0, %v1046_v50, 0.0 }
 0x34c   : > { %v1088_v52 = vsel %vm417_vm0, %v1027_v51, 0.0 }
 0x34d   : > { %v1090_v54 = vadd.f32 %v1089_v53, %v1088_v52 }
 0x34e   : > { %v1084_v30 = vpop.f32.mrf.mxu3 }
 0x34f   : > { %v1065_v55 = vpop.f32.mrf.mxu2  ;;  %v1093_v59 = vsel %vm417_vm0, %v1084_v30, 0.0 }
 0x350   : > { %v1091_v56 = vsel %vm417_vm0, %v1065_v55, 0.0 }
 0x351   : > { %v1092_v57 = vadd.f32 %v1091_v56, %v1090_v54 }
 0x352   : > { %v1048_v60 = vpop.f32.mrf.mxu1 }
 0x353   : > { %v1094_v61 = vadd.f32 %v1093_v59, %v1092_v57  ;;  %v1029_v62 = vpop.f32.mrf.mxu0 }
 0x355   : > { %v1099_v63 = vadd.f32 %v1393_v58, %v1094_v61 }
 0x356   : > { %v1086_v0 = vpop.f32.mrf.mxu3 }
 0x357   : > { %v1067_v1 = vpop.f32.mrf.mxu2  ;;  %1100 = vst.msk [vmem:[%s361_s29] sm:$0xff] %vm417_vm0, %v1099_v63 }
 0x358   : > { %1437 = shalt.err (!%p1434_p3)
}
 0x359   : > { %1339 = dma.vmem_to_hbm [thread:$0]  (%p1568_p5), %s1115_s17, 128, %s1117_s30, %s1102_s12  }
 0x35a PF: > { %p1345_p4 = scmp.ge.s32.totalorder %s1472_s16, 2  ;;  %s1128_s19 = sand.u32 1, %s1460_s13  }
 0x35b   : > { %s1129_s21 = scalar_lea.sflag [#allocation3], %s1128_s19 }
 0x35c   : > { %p1342_p7 = pnand %p1345_p4, %p1572_p6 }
 0x35e   : > { %p1343_p8 = pneg %p1342_p7 }
 0x360   : > { %1455 = dma.done.wait (%p1343_p8), %s1129_s21, 128  }
 0x361   : > { %1457 = vsyncadd (%p1343_p8), %s1129_s21, 4294967168  ;;  %s1817_s16 = sld [smem:[#allocation6_spill]]  ;;  %s1820_s13 = smov %s1464_s14 }
 0x362   : > { %s1818_s25 = sld [smem:[#allocation5_spill]] }
 0x363   : > { %s1819_s15 = sld [smem:[#allocation7_spill]] }
 0x367   : > { %p20_p9 = scmp.ge.s32.totalorder %s1817_s16, 4  }
 0x368   : > { %s1821_s14 = smov %s1818_s25 }
 0x369   :  { %22 = sbr.rel (!%p20_p9) target bundleno = 3 (0x3), region = 98 }
 0x36e   :  { %1135 = vsyncpa [#allocation3], 1 }
 0x36f   :  { %1137 = vsyncpa [#allocation3 + $0x1], 1 }

</bundles_post_ra>
